<compile_context>
chip_gen: v6e
topology: v6e:2x2x1
jax: 0.10.0
libtpu: 0.0.40
codegen_flags: <defaults>
</compile_context>

<pallas_src>
import functools

import jax
import jax.numpy as jnp
from jax.experimental import pallas as pl
from jax.experimental.pallas import tpu as pltpu


def _upsample_kernel(alpha_ref, x_ref, b_ref, bias_ref, o_ref, xpad_ref):
    # alpha_ref : (1,)              SMEM, shared PReLU slope
    # x_ref     : (1, C, H, W)      raw NCHW input block (one batch element)
    # b_ref     : (3, C*(W+2), Q)   banded weights, Q = C*r*r*W, cols (c,i,w,j)
    # bias_ref  : (1, Q)            bias expanded to the (c,i,w,j) column order
    # o_ref     : (1, C, H, r*r*W)  output; free-reshapes to (C, H*r, W*r)
    # xpad_ref  : (H+2, C*(W+2))    VMEM staging: zero-padded rows, (cin,wp) lanes
    C = x_ref.shape[1]
    H = x_ref.shape[2]
    W = x_ref.shape[3]
    Wp = W + 2
    Q = b_ref.shape[2]
    rrW = o_ref.shape[3]

    # Pad + layout staging folded into the kernel: zero the row buffer, then
    # drop each NCHW channel plane into its dense (cin, wp) lane block.
    xpad_ref[...] = jnp.zeros_like(xpad_ref)
    for cin in range(C):
        off = cin * Wp + 1
        xpad_ref[1:H + 1, off:off + W] = x_ref[0, cin, :, :]

    # Three row-GEMMs (one per dy).  The dx taps and the pixel-shuffle column
    # permutation live in b_ref, so the MXU emits the lane-dense (H, Q) result
    # directly — no im2col patch, no output relayout.
    acc = None
    for dy in range(3):
        lhs = xpad_ref[dy:dy + H, :]
        if b_ref.dtype != jnp.float32:        # optional bf16 MXU path
            lhs = lhs.astype(b_ref.dtype)
        part = jnp.dot(lhs, b_ref[dy], preferred_element_type=jnp.float32)
        acc = part if acc is None else acc + part

    acc = acc + bias_ref[...]                 # (1, Q) broadcasts over H
    alpha = alpha_ref[0]
    acc = jnp.where(acc >= 0, acc, alpha * acc)   # PReLU (single shared slope)

    # Per input channel c, lanes [c*rrW, (c+1)*rrW) are ordered (i, w, j),
    # i.e. exactly the r output rows {h*r+i} of the shuffled image: dense store.
    for c in range(C):
        o_ref[0, c, :, :] = acc[:, c * rrW:(c + 1) * rrW].astype(o_ref.dtype)


def _prepare_banded_params(weight, bias, up_scale, W, dtype=jnp.float32):
    """Weight-only prep (cacheable for inference): banded conv weights whose
    columns are ordered (c, i, w, j) so the GEMM output is already shuffled."""
    Cout, Cin, KH, KW = weight.shape
    r = up_scale
    C = Cin
    assert Cout == C * r * r and (KH, KW) == (3, 3)
    Wp = W + 2
    Q = C * r * W * r

    wp = jnp.arange(Wp)[:, None]                      # padded column index
    w = jnp.arange(W)[None, :]                        # output column index
    dx = wp - w                                       # (Wp, W)
    valid = ((dx >= 0) & (dx < KW)).astype(weight.dtype)
    dx_c = jnp.clip(dx, 0, KW - 1)

    # weight[co, cin, dy, dx] with co = c*r*r + i*r + j  ->  (c, i, j, cin, dy, dx)
    wt = weight.reshape(C, r, r, C, KH, KW)
    # band over (wp, w): (c, i, j, cin, dy, Wp, W), zero outside the 3-tap band.
    bt = wt[..., dx_c] * valid
    # -> (dy, cin, wp, c, i, w, j)
    bt = jnp.transpose(bt, (4, 3, 5, 0, 1, 6, 2))
    B = bt.reshape(KH, C * Wp, Q).astype(dtype)

    # bias expanded to the (c, i, w, j) column order; epilogue stays f32.
    bias_col = jnp.broadcast_to(
        bias.reshape(C, r, 1, r), (C, r, W, r)).reshape(1, Q).astype(jnp.float32)
    return B, bias_col


def upsample_block(x, weight, bias, alpha, up_scale, *, compute_dtype=jnp.float32):
    """Forward of UpsampleBLock.  x: (N, C, H, W) f32 -> (N, C, H*r, W*r) f32."""
    N, C, H, W = x.shape
    r = up_scale
    Wp = W + 2
    Q = C * r * W * r
    rrW = r * r * W

    # Weight-only transforms (would be precomputed/cached in real inference).
    B, bias_col = _prepare_banded_params(weight, bias, r, W, compute_dtype)
    alpha1 = jnp.asarray(alpha, jnp.float32).reshape(1)

    itemsize = 4
    cost = pl.CostEstimate(
        flops=2 * N * H * (3 * C * Wp) * Q,
        transcendentals=0,
        bytes_accessed=(N * C * H * W + 3 * C * Wp * Q + Q + N * C * H * rrW)
        * itemsize,
    )

    out = pl.pallas_call(
        _upsample_kernel,
        out_shape=jax.ShapeDtypeStruct((N, C, H, rrW), jnp.float32),
        grid_spec=pltpu.PrefetchScalarGridSpec(
            num_scalar_prefetch=0,
            grid=(N,),
            in_specs=[
                pl.BlockSpec(memory_space=pltpu.MemorySpace.SMEM),        # alpha
                pl.BlockSpec((1, C, H, W), lambda n: (n, 0, 0, 0)),       # x NCHW
                pl.BlockSpec((3, C * Wp, Q), lambda n: (0, 0, 0)),        # banded W
                pl.BlockSpec((1, Q), lambda n: (0, 0)),                   # bias
            ],
            out_specs=pl.BlockSpec((1, C, H, rrW), lambda n: (n, 0, 0, 0)),
            scratch_shapes=[pltpu.VMEM((H + 2, C * Wp), jnp.float32)],
        ),
        compiler_params=pltpu.CompilerParams(
            dimension_semantics=("parallel",)),
        cost_estimate=cost,
    )(alpha1, x, B, bias_col)

    # The only remaining wrapper op: a contiguous (free) reshape.
    # out[n, c, h, i*(W*r) + w*r + j] -> y[n, c, h*r+i, w*r+j]
    return out.reshape(N, C, H * r, W * r)


def _reference(x, weight, bias, alpha, r):
    """Pure-JAX reference: conv(pad=1) -> pixel shuffle -> PReLU, NCHW."""
    N, C, H, W = x.shape
    y = jax.lax.conv_general_dilated(
        x, weight, window_strides=(1, 1), padding=((1, 1), (1, 1)),
        dimension_numbers=("NCHW", "OIHW", "NCHW"))
    y = y + bias[None, :, None, None]
    y = y.reshape(N, C, r, r, H, W)
    y = jnp.transpose(y, (0, 1, 4, 2, 5, 3)).reshape(N, C, H * r, W * r)
    return jnp.where(y >= 0, y, alpha * y)


if __name__ == "__main__":
    # Small shapes consistent with the module: in_channels=4, up_scale=2.
    N, C, H, W = 2, 4, 16, 16
    r = 2
    Cout = C * r * r

    key = jax.random.PRNGKey(0)
    kx, kw, kb = jax.random.split(key, 3)
    x = jax.random.normal(kx, (N, C, H, W), jnp.float32)
    # Synthetic parameters, shapes per nn.Conv2d(C, C*r*r, 3, padding=1) + nn.PReLU().
    weight = 0.1 * jax.random.normal(kw, (Cout, C, 3, 3), jnp.float32)
    bias = 0.1 * jax.random.normal(kb, (Cout,), jnp.float32)
    alpha = jnp.float32(0.25)   # nn.PReLU() default: single shared slope

    fwd = jax.jit(functools.partial(upsample_block, up_scale=r))
    out = fwd(x, weight, bias, alpha)
    out = jax.block_until_ready(out)

    ref = _reference(x, weight, bias, alpha, r)
    assert out.shape == (N, C, H * r, W * r), out.shape
    max_err = float(jnp.max(jnp.abs(out - ref)))
    assert jnp.allclose(out, ref, atol=1e-4, rtol=1e-4), (
        f"mismatch vs reference (max |err| = {max_err})")
    print("KERNEL_OK")
</pallas_src>

<mosaic_0001>
module attributes {stable_mosaic.version = 11 : i64} {
  func.func @_upsample_kernel(%arg0: i32, %arg1: memref<1xf32, #tpu.memory_space<smem>>, %arg2: memref<1x4x16x16xf32, #tpu.memory_space<vmem>>, %arg3: memref<3x72x256xf32, #tpu.memory_space<vmem>>, %arg4: memref<1x256xf32, #tpu.memory_space<vmem>>, %arg5: memref<1x4x16x64xf32, #tpu.memory_space<vmem>>, %arg6: memref<18x72xf32, #tpu.memory_space<vmem>>) attributes {dimension_semantics = [#tpu.dimension_semantics<parallel>], iteration_bounds = array<i64: 2>, scalar_prefetch = 0 : i64, scratch_operands = 1 : i64, tpu.core_type = #tpu.core_type<tc>, window_params = [{transform_indices = @transform_0, window_bounds = array<i64: 1>}, {transform_indices = @transform_1, window_bounds = array<i64: 1, 4, 16, 16>}, {pipeline_mode = #tpu.pipeline_mode<synchronous>, transform_indices = @transform_2, window_bounds = array<i64: 3, 72, 256>}, {pipeline_mode = #tpu.pipeline_mode<synchronous>, transform_indices = @transform_3, window_bounds = array<i64: 1, 256>}, {transform_indices = @transform_4, window_bounds = array<i64: 1, 4, 16, 64>}]} {
    %cst = arith.constant 0.000000e+00 : f32
    %0 = vector.broadcast %cst : f32 to vector<18x72xf32>
    %c0 = arith.constant 0 : index
    %c0_0 = arith.constant 0 : index
    %1 = vector.load %arg6[%c0, %c0_0] : memref<18x72xf32, #tpu.memory_space<vmem>>, vector<18x72xf32>
    tpu.vector_store %arg6[%c0, %c0_0], %0 {strides = array<i32>} : memref<18x72xf32, #tpu.memory_space<vmem>>, vector<18x72xf32>,
    %c0_1 = arith.constant 0 : index
    %c0_2 = arith.constant 0 : index
    %c0_3 = arith.constant 0 : index
    %c0_4 = arith.constant 0 : index
    %2 = vector.load %arg2[%c0_1, %c0_2, %c0_3, %c0_4] : memref<1x4x16x16xf32, #tpu.memory_space<vmem>>, vector<1x1x16x16xf32>
    %3 = vector.shape_cast %2 : vector<1x1x16x16xf32> to vector<16x16xf32>
    %c1 = arith.constant 1 : index
    %c1_5 = arith.constant 1 : index
    %4 = vector.load %arg6[%c1, %c1_5] : memref<18x72xf32, #tpu.memory_space<vmem>>, vector<16x16xf32>
    tpu.vector_store %arg6[%c1, %c1_5], %3 {strides = array<i32>} : memref<18x72xf32, #tpu.memory_space<vmem>>, vector<16x16xf32>,
    %c0_6 = arith.constant 0 : index
    %c1_7 = arith.constant 1 : index
    %c0_8 = arith.constant 0 : index
    %c0_9 = arith.constant 0 : index
    %5 = vector.load %arg2[%c0_6, %c1_7, %c0_8, %c0_9] : memref<1x4x16x16xf32, #tpu.memory_space<vmem>>, vector<1x1x16x16xf32>
    %6 = vector.shape_cast %5 : vector<1x1x16x16xf32> to vector<16x16xf32>
    %c1_10 = arith.constant 1 : index
    %c19 = arith.constant 19 : index
    %7 = vector.load %arg6[%c1_10, %c19] : memref<18x72xf32, #tpu.memory_space<vmem>>, vector<16x16xf32>
    tpu.vector_store %arg6[%c1_10, %c19], %6 {strides = array<i32>} : memref<18x72xf32, #tpu.memory_space<vmem>>, vector<16x16xf32>,
    %c0_11 = arith.constant 0 : index
    %c2 = arith.constant 2 : index
    %c0_12 = arith.constant 0 : index
    %c0_13 = arith.constant 0 : index
    %8 = vector.load %arg2[%c0_11, %c2, %c0_12, %c0_13] : memref<1x4x16x16xf32, #tpu.memory_space<vmem>>, vector<1x1x16x16xf32>
    %9 = vector.shape_cast %8 : vector<1x1x16x16xf32> to vector<16x16xf32>
    %c1_14 = arith.constant 1 : index
    %c37 = arith.constant 37 : index
    %10 = vector.load %arg6[%c1_14, %c37] : memref<18x72xf32, #tpu.memory_space<vmem>>, vector<16x16xf32>
    tpu.vector_store %arg6[%c1_14, %c37], %9 {strides = array<i32>} : memref<18x72xf32, #tpu.memory_space<vmem>>, vector<16x16xf32>,
    %c0_15 = arith.constant 0 : index
    %c3 = arith.constant 3 : index
    %c0_16 = arith.constant 0 : index
    %c0_17 = arith.constant 0 : index
    %11 = vector.load %arg2[%c0_15, %c3, %c0_16, %c0_17] : memref<1x4x16x16xf32, #tpu.memory_space<vmem>>, vector<1x1x16x16xf32>
    %12 = vector.shape_cast %11 : vector<1x1x16x16xf32> to vector<16x16xf32>
    %c1_18 = arith.constant 1 : index
    %c55 = arith.constant 55 : index
    %13 = vector.load %arg6[%c1_18, %c55] : memref<18x72xf32, #tpu.memory_space<vmem>>, vector<16x16xf32>
    tpu.vector_store %arg6[%c1_18, %c55], %12 {strides = array<i32>} : memref<18x72xf32, #tpu.memory_space<vmem>>, vector<16x16xf32>,
    %c0_19 = arith.constant 0 : index
    %c0_20 = arith.constant 0 : index
    %14 = vector.load %arg6[%c0_19, %c0_20] : memref<18x72xf32, #tpu.memory_space<vmem>>, vector<16x72xf32>
    %c0_21 = arith.constant 0 : index
    %c0_22 = arith.constant 0 : index
    %c0_23 = arith.constant 0 : index
    %15 = vector.load %arg3[%c0_21, %c0_22, %c0_23] : memref<3x72x256xf32, #tpu.memory_space<vmem>>, vector<1x72x256xf32>
    %16 = vector.shape_cast %15 : vector<1x72x256xf32> to vector<72x256xf32>
    %cst_24 = arith.constant dense<0.000000e+00> : vector<16x256xf32>
    %17 = tpu.matmul %14, %16, %cst_24 {dimension_numbers = #tpu.dot_dimension_numbers<[1], [0], [0], [1], [0, 0, 1, 1], [], []>} : vector<16x72xf32>, vector<72x256xf32>, vector<16x256xf32> -> vector<16x256xf32>
    %c1_25 = arith.constant 1 : index
    %c0_26 = arith.constant 0 : index
    %18 = vector.load %arg6[%c1_25, %c0_26] : memref<18x72xf32, #tpu.memory_space<vmem>>, vector<16x72xf32>
    %c1_27 = arith.constant 1 : index
    %c0_28 = arith.constant 0 : index
    %c0_29 = arith.constant 0 : index
    %19 = vector.load %arg3[%c1_27, %c0_28, %c0_29] : memref<3x72x256xf32, #tpu.memory_space<vmem>>, vector<1x72x256xf32>
    %20 = vector.shape_cast %19 : vector<1x72x256xf32> to vector<72x256xf32>
    %cst_30 = arith.constant dense<0.000000e+00> : vector<16x256xf32>
    %21 = tpu.matmul %18, %20, %cst_30 {dimension_numbers = #tpu.dot_dimension_numbers<[1], [0], [0], [1], [0, 0, 1, 1], [], []>} : vector<16x72xf32>, vector<72x256xf32>, vector<16x256xf32> -> vector<16x256xf32>
    %22 = arith.addf %17, %21 : vector<16x256xf32>
    %c2_31 = arith.constant 2 : index
    %c0_32 = arith.constant 0 : index
    %23 = vector.load %arg6[%c2_31, %c0_32] : memref<18x72xf32, #tpu.memory_space<vmem>>, vector<16x72xf32>
    %c2_33 = arith.constant 2 : index
    %c0_34 = arith.constant 0 : index
    %c0_35 = arith.constant 0 : index
    %24 = vector.load %arg3[%c2_33, %c0_34, %c0_35] : memref<3x72x256xf32, #tpu.memory_space<vmem>>, vector<1x72x256xf32>
    %25 = vector.shape_cast %24 : vector<1x72x256xf32> to vector<72x256xf32>
    %cst_36 = arith.constant dense<0.000000e+00> : vector<16x256xf32>
    %26 = tpu.matmul %23, %25, %cst_36 {dimension_numbers = #tpu.dot_dimension_numbers<[1], [0], [0], [1], [0, 0, 1, 1], [], []>} : vector<16x72xf32>, vector<72x256xf32>, vector<16x256xf32> -> vector<16x256xf32>
    %27 = arith.addf %22, %26 : vector<16x256xf32>
    %c0_37 = arith.constant 0 : index
    %c0_38 = arith.constant 0 : index
    %28 = vector.load %arg4[%c0_37, %c0_38] : memref<1x256xf32, #tpu.memory_space<vmem>>, vector<1x256xf32>
    %29 = vector.broadcast %28 : vector<1x256xf32> to vector<16x256xf32>
    %30 = arith.addf %27, %29 : vector<16x256xf32>
    %c0_39 = arith.constant 0 : index
    %31 = memref.load %arg1[%c0_39] : memref<1xf32, #tpu.memory_space<smem>>
    %cst_40 = arith.constant 0.000000e+00 : f32
    %32 = vector.broadcast %cst_40 : f32 to vector<16x256xf32>
    %33 = arith.cmpf oge, %30, %32 : vector<16x256xf32>
    %34 = vector.broadcast %31 : f32 to vector<16x256xf32>
    %35 = arith.mulf %34, %30 : vector<16x256xf32>
    %36 = arith.select %33, %30, %35 : vector<16x256xi1>, vector<16x256xf32>
    %37 = vector.extract_strided_slice %36 {offsets = [0, 0], sizes = [16, 64], strides = [1, 1]} : vector<16x256xf32> to vector<16x64xf32>
    %c0_41 = arith.constant 0 : index
    %c0_42 = arith.constant 0 : index
    %c0_43 = arith.constant 0 : index
    %c0_44 = arith.constant 0 : index
    %38 = vector.load %arg5[%c0_41, %c0_42, %c0_43, %c0_44] : memref<1x4x16x64xf32, #tpu.memory_space<vmem>>, vector<1x1x16x64xf32>
    %39 = vector.shape_cast %38 : vector<1x1x16x64xf32> to vector<16x64xf32>
    %40 = vector.shape_cast %37 : vector<16x64xf32> to vector<1x1x16x64xf32>
    tpu.vector_store %arg5[%c0_41, %c0_42, %c0_43, %c0_44], %40 {strides = array<i32>} : memref<1x4x16x64xf32, #tpu.memory_space<vmem>>, vector<1x1x16x64xf32>,
    %41 = vector.extract_strided_slice %36 {offsets = [0, 64], sizes = [16, 64], strides = [1, 1]} : vector<16x256xf32> to vector<16x64xf32>
    %c0_45 = arith.constant 0 : index
    %c1_46 = arith.constant 1 : index
    %c0_47 = arith.constant 0 : index
    %c0_48 = arith.constant 0 : index
    %42 = vector.load %arg5[%c0_45, %c1_46, %c0_47, %c0_48] : memref<1x4x16x64xf32, #tpu.memory_space<vmem>>, vector<1x1x16x64xf32>
    %43 = vector.shape_cast %42 : vector<1x1x16x64xf32> to vector<16x64xf32>
    %44 = vector.shape_cast %41 : vector<16x64xf32> to vector<1x1x16x64xf32>
    tpu.vector_store %arg5[%c0_45, %c1_46, %c0_47, %c0_48], %44 {strides = array<i32>} : memref<1x4x16x64xf32, #tpu.memory_space<vmem>>, vector<1x1x16x64xf32>,
    %45 = vector.extract_strided_slice %36 {offsets = [0, 128], sizes = [16, 64], strides = [1, 1]} : vector<16x256xf32> to vector<16x64xf32>
    %c0_49 = arith.constant 0 : index
    %c2_50 = arith.constant 2 : index
    %c0_51 = arith.constant 0 : index
    %c0_52 = arith.constant 0 : index
    %46 = vector.load %arg5[%c0_49, %c2_50, %c0_51, %c0_52] : memref<1x4x16x64xf32, #tpu.memory_space<vmem>>, vector<1x1x16x64xf32>
    %47 = vector.shape_cast %46 : vector<1x1x16x64xf32> to vector<16x64xf32>
    %48 = vector.shape_cast %45 : vector<16x64xf32> to vector<1x1x16x64xf32>
    tpu.vector_store %arg5[%c0_49, %c2_50, %c0_51, %c0_52], %48 {strides = array<i32>} : memref<1x4x16x64xf32, #tpu.memory_space<vmem>>, vector<1x1x16x64xf32>,
    %49 = vector.extract_strided_slice %36 {offsets = [0, 192], sizes = [16, 64], strides = [1, 1]} : vector<16x256xf32> to vector<16x64xf32>
    %c0_53 = arith.constant 0 : index
    %c3_54 = arith.constant 3 : index
    %c0_55 = arith.constant 0 : index
    %c0_56 = arith.constant 0 : index
    %50 = vector.load %arg5[%c0_53, %c3_54, %c0_55, %c0_56] : memref<1x4x16x64xf32, #tpu.memory_space<vmem>>, vector<1x1x16x64xf32>
    %51 = vector.shape_cast %50 : vector<1x1x16x64xf32> to vector<16x64xf32>
    %52 = vector.shape_cast %49 : vector<16x64xf32> to vector<1x1x16x64xf32>
    tpu.vector_store %arg5[%c0_53, %c3_54, %c0_55, %c0_56], %52 {strides = array<i32>} : memref<1x4x16x64xf32, #tpu.memory_space<vmem>>, vector<1x1x16x64xf32>,
    return
  }
  func.func @transform_0(%arg0: i32) -> i32 {
    %c0_i32 = arith.constant 0 : i32
    %c0_i32_0 = arith.constant 0 : i32
    return %c0_i32 : i32
  }
  func.func @transform_1(%arg0: i32) -> (i32, i32, i32, i32) {
    %c0_i32 = arith.constant 0 : i32
    %c0_i32_0 = arith.constant 0 : i32
    %c0_i32_1 = arith.constant 0 : i32
    %c0_i32_2 = arith.constant 0 : i32
    return %arg0, %c0_i32, %c0_i32_0, %c0_i32_1 : i32, i32, i32, i32
  }
  func.func @transform_2(%arg0: i32) -> (i32, i32, i32) {
    %c0_i32 = arith.constant 0 : i32
    %c0_i32_0 = arith.constant 0 : i32
    %c0_i32_1 = arith.constant 0 : i32
    %c0_i32_2 = arith.constant 0 : i32
    return %c0_i32, %c0_i32_0, %c0_i32_1 : i32, i32, i32
  }
  func.func @transform_3(%arg0: i32) -> (i32, i32) {
    %c0_i32 = arith.constant 0 : i32
    %c0_i32_0 = arith.constant 0 : i32
    %c0_i32_1 = arith.constant 0 : i32
    return %c0_i32, %c0_i32_0 : i32, i32
  }
  func.func @transform_4(%arg0: i32) -> (i32, i32, i32, i32) {
    %c0_i32 = arith.constant 0 : i32
    %c0_i32_0 = arith.constant 0 : i32
    %c0_i32_1 = arith.constant 0 : i32
    %c0_i32_2 = arith.constant 0 : i32
    return %arg0, %c0_i32, %c0_i32_0, %c0_i32_1 : i32, i32, i32, i32
  }
}

</mosaic_0001>

<bundles_post_ra>
// kernel: upsample_block.1
= control target key start
LH: loop header
LB: loop body
LE: loop exit
PB: predicated region body
PF: predicated region fallthrough
CT: control target
= control target key end

     0   :  { %s828_s17 = smov 0   ;;  %s1068_s0 = inlined_call_operand.<no memory space> [shape: f32[1], index: 0, kind: input, shape index: {}]   ;;  %s1069_s1 = inlined_call_operand.vmem [shape: f32[2,4,16,16], index: 1, kind: input, shape index: {}]   ;;  %s1070_s2 = inlined_call_operand.vmem [shape: f32[3,72,256], index: 2, kind: input, shape index: {}]   ;;  %s1071_s3 = inlined_call_operand.vmem [shape: f32[1,256], index: 3, kind: input, shape index: {}]   ;;  %s1072_s4 = inlined_call_operand.vmem [shape: f32[2,4,16,64], index: 4, kind: output, shape index: {}]  }
   0x1   :  { %9 = sst [smem:[#allocation3]] %s1068_s0 }
   0x2 LB: > { %s687_s18 = sadd.s32 4294967295, %s792_s17   ;;  %p691_p0 = scmp.ge.s32.totalorder %s792_s17, 1  ;;  %s792_s17 = sphi %s828_s17, %s15_s17  }
   0x3   : > { %p163_p1 = scmp.lt.s32.totalorder %s792_s17, 3 }
   0x5   : > { %p164_p2 = pnand %p691_p0, %p163_p1 }
   0x6   : > { %p189_p3 = scmp.lt.s32.totalorder (!%p164_p2), %s687_s18, 1  ;;  %s795_s29 = smov (!%p164_p2), 1  }
   0x7   : > { %167 = sbr.rel (%p164_p2) target bundleno = 490 (0x1ea), region = 36  ;;  %s796_s30 = smov (!%p164_p2), 37  }
   0x8   : > { %s797_s20 = smov (!%p164_p2), 19   ;;  %s798_s21 = smov (!%p164_p2), 55  }
   0x9   : > { %s590_s14 = sld [smem:[#allocation3]] (!%p164_p2) }
   0xc   : > { %v719_v0 = vld [vmem:[%s1070_s2 + $0x118] sm:$0xff]  ;;  %v278_v1 = vld [vmem:[%s1070_s2 + $0x88] sm:$0xff]  ;;  %v718_v2 = vld [vmem:[%s1070_s2 + $0x110] sm:$0xff]  ;;  %vm199_vm0 = vcmask 588800   ;;  %s1074_s18 = smov (!%p189_p3, %s687_s18), 1  ;;  %v794_v9 = vmov 0.0  }
   0xd   : > { %320 = vmatprep.subr.mxu0 %v719_v0  ;;  %403 = vmatprep.subr.mxu1 %v278_v1  ;;  %v277_v3 = vld [vmem:[%s1070_s2 + $0x80] sm:$0xff]  ;;  %v717_v4 = vld [vmem:[%s1070_s2 + $0x108] sm:$0xff]  ;;  %v276_v5 = vld [vmem:[%s1070_s2 + $0x78] sm:$0xff]  ;;  %200 = vst.msk [vmem:[#allocation2] sm:$0xff] %vm199_vm0, %v794_v9  ;;  %s752_s16 = sshll.u32 %s1074_s18, 6  ;;  %vm202_vm1 = vcmask 582656  }
   0xe   : > { %321 = vmatpush1.msra.mxu0 %v718_v2  ;;  %404 = vmatpush1.msra.mxu1 %v277_v3  ;;  %v716_v6 = vld [vmem:[%s1070_s2 + $0x100] sm:$0xff]  ;;  %v275_v7 = vld [vmem:[%s1070_s2 + $0x70] sm:$0xff]  ;;  %v715_v8 = vld [vmem:[%s1070_s2 + $0xf8] sm:$0xff]  ;;  %201 = vst.msk [vmem:[#allocation2 + $0x8] sm:$0xff] %vm199_vm0, %v794_v9  ;;  %s884_s0 = scalar_lea.vmem %s1069_s1, %s752_s16  ;;  %vm214_vm2 = vcmask 138248   ;;  %vm228_vm3 = vcmask 285848   ;;  %s1047_s22 = scalar_lea.vmem %s1072_s4, %s752_s16 }
   0xf   : > { %322 = vmatprep.subr.mxu0 %v717_v4  ;;  %405 = vmatprep.subr.mxu1 %v276_v5  ;;  %v274_v10 = vld [vmem:[%s1070_s2 + $0x68] sm:$0xff]  ;;  %v714_v11 = vld [vmem:[%s1070_s2 + $0xf0] sm:$0xff]  ;;  %v273_v12 = vld [vmem:[%s1070_s2 + $0x60] sm:$0xff]  ;;  %203 = vst.msk [vmem:[#allocation2 + $0x10] sm:$0x3] %vm202_vm1, %v794_v9  ;;  %vm242_vm4 = vcmask 433448  }
  0x10   : > { %323 = vmatpush1.msra.mxu0 %v716_v6  ;;  %406 = vmatpush1.msra.mxu1 %v275_v7  ;;  %v713_v13 = vld [vmem:[%s1070_s2 + $0xe8] sm:$0xff]  ;;  %v272_v14 = vld [vmem:[%s1070_s2 + $0x58] sm:$0xff]  ;;  %v712_v15 = vld [vmem:[%s1070_s2 + $0xe0] sm:$0xff]  ;;  %vm256_vm5 = vcmask 581048   ;;  %vm604_vm6 = vcmask 523264   ;;  %s799_s18 = smov 64  }
  0x11   : > { %324 = vmatprep.subr.mxu0 %v715_v8  ;;  %407 = vmatprep.subr.mxu1 %v274_v10  ;;  %v204_v16 = vld [vmem:[%s884_s0] sm:$0xff]  ;;  %v271_v18 = vld [vmem:[%s1070_s2 + $0x50] sm:$0xff]  ;;  %v711_v19 = vld [vmem:[%s1070_s2 + $0xd8] sm:$0xff] }
  0x12   : > { %v698_v17 = vld [vmem:[%s884_s0 + $0x20] sm:$0xff]  ;;  %325 = vmatpush1.msra.mxu0 %v714_v11  ;;  %408 = vmatpush1.msra.mxu1 %v273_v12  ;;  %v270_v20 = vld [vmem:[%s1070_s2 + $0x48] sm:$0xff]  ;;  %v696_v21 = vld [vmem:[%s884_s0 + $0x10] sm:$0xff] }
  0x13   : > { %208 = vrot.lane.b32.xlu0 %v204_v16, %s795_s29  ;;  %236 = vrot.lane.b32.xlu1 %v698_v17, %s796_s30  ;;  %v700_v22 = vld [vmem:[%s884_s0 + $0x30] sm:$0xff]  ;;  %v269_v24 = vld [vmem:[%s1070_s2 + $0x40] sm:$0xff] }
  0x14   : > { %326 = vmatprep.subr.mxu0 %v713_v13  ;;  %409 = vmatprep.subr.mxu1 %v272_v14  ;;  %v710_v23 = vld [vmem:[%s1070_s2 + $0xd0] sm:$0xff]  ;;  %v709_v25 = vld [vmem:[%s1070_s2 + $0xc8] sm:$0xff]  ;;  %v268_v26 = vld [vmem:[%s1070_s2 + $0x38] sm:$0xff]  ;;  %v576_v14 = vlaneseq }
  0x15   : > { %327 = vmatpush1.msra.mxu0 %v712_v15  ;;  %410 = vmatpush1.msra.mxu1 %v271_v18  ;;  %v708_v27 = vld [vmem:[%s1070_s2 + $0xc0] sm:$0xff]  ;;  %v267_v28 = vld [vmem:[%s1070_s2 + $0x30] sm:$0xff]  ;;  %v205_v29 = vld [vmem:[%s884_s0 + $0x8] sm:$0xff] }
  0x16   : > { %328 = vmatprep.subr.mxu0 %v711_v19  ;;  %411 = vmatprep.subr.mxu1 %v270_v20  ;;  %v697_v30 = vld [vmem:[%s884_s0 + $0x18] sm:$0xff]  ;;  %v266_v32 = vld [vmem:[%s1070_s2 + $0x28] sm:$0xff]  ;;  %v706_v33 = vld [vmem:[%s1070_s2 + $0xb0] sm:$0xff]  ;;  %v577_v17 = vshrl.u32 %v576_v14, 7 }
  0x17   : > { %222 = vrot.lane.b32.xlu0 %v696_v21, %s797_s20  ;;  %250 = vrot.lane.b32.xlu1 %v700_v22, %s798_s21  ;;  %v707_v31 = vld [vmem:[%s1070_s2 + $0xb8] sm:$0xff]  ;;  %v265_v34 = vld [vmem:[%s1070_s2 + $0x20] sm:$0xff] }
  0x18   : > { %329 = vmatpush1.msra.mxu0 %v710_v23  ;;  %412 = vmatpush1.msra.mxu1 %v269_v24  ;;  %v705_v35 = vld [vmem:[%s1070_s2 + $0xa8] sm:$0xff]  ;;  %v264_v36 = vld [vmem:[%s1070_s2 + $0x18] sm:$0xff]  ;;  %v704_v39 = vld [vmem:[%s1070_s2 + $0xa0] sm:$0xff]  ;;  %v578_v22 = vsub.s32 0, %v577_v17  ;;  %v582_v23 = vsub.s32 1, %v577_v17 }
  0x19   : > { %330 = vmatprep.subr.mxu0 %v709_v25  ;;  %413 = vmatprep.subr.mxu1 %v268_v26  ;;  %v699_v37 = vld [vmem:[%s884_s0 + $0x28] sm:$0xff]  ;;  %v701_v38 = vld [vmem:[%s884_s0 + $0x38] sm:$0xff]  ;;  %v263_v40 = vld [vmem:[%s1070_s2 + $0x10] sm:$0xff] }
  0x1a   : > { %331 = vmatpush1.msra.mxu0 %v708_v27  ;;  %414 = vmatpush1.msra.mxu1 %v267_v28  ;;  %v703_v41 = vld [vmem:[%s1070_s2 + $0x98] sm:$0xff]  ;;  %v262_v42 = vld [vmem:[%s1070_s2 + $0x8] sm:$0xff]  ;;  %v702_v43 = vld [vmem:[%s1070_s2 + $0x90] sm:$0xff] }
  0x1b   : > { %210 = vrot.lane.b32.xlu0 %v205_v29, %s795_s29  ;;  %224 = vrot.lane.b32.xlu1 %v697_v30, %s797_s20  ;;  %v261_v44 = vld [vmem:[%s1070_s2] sm:$0xff]  ;;  %v741_v45 = vld [vmem:[%s1070_s2 + $0x1a8] sm:$0xff] }
  0x1c   : > { %332 = vmatprep.subr.mxu0 %v707_v31  ;;  %415 = vmatprep.subr.mxu1 %v266_v32  ;;  %v740_v54 = vld [vmem:[%s1070_s2 + $0x1a0] sm:$0xff]  ;;  %v739_v57 = vld [vmem:[%s1070_s2 + $0x198] sm:$0xff]  ;;  %v738_v58 = vld [vmem:[%s1070_s2 + $0x190] sm:$0xff] }
  0x1d   : > { %333 = vmatpush1.msra.mxu0 %v706_v33  ;;  %416 = vmatpush1.msra.mxu1 %v265_v34  ;;  %v737_v59 = vld [vmem:[%s1070_s2 + $0x188] sm:$0xff]  ;;  %v736_v60 = vld [vmem:[%s1070_s2 + $0x180] sm:$0xff]  ;;  %v735_v61 = vld [vmem:[%s1070_s2 + $0x178] sm:$0xff] }
  0x1e   : > { %334 = vmatprep.subr.mxu0 %v705_v35  ;;  %417 = vmatprep.subr.mxu1 %v264_v36  ;;  %v734_v62 = vld [vmem:[%s1070_s2 + $0x170] sm:$0xff]  ;;  %v733_v1 = vld [vmem:[%s1070_s2 + $0x168] sm:$0xff]  ;;  %v732_v2 = vld [vmem:[%s1070_s2 + $0x160] sm:$0xff] }
  0x1f   : > { %238 = vrot.lane.b32.xlu0 %v699_v37, %s796_s30  ;;  %252 = vrot.lane.b32.xlu1 %v701_v38, %s798_s21  ;;  %v731_v3 = vld [vmem:[%s1070_s2 + $0x158] sm:$0xff]  ;;  %v730_v4 = vld [vmem:[%s1070_s2 + $0x150] sm:$0xff] }
  0x20   : > { %335 = vmatpush1.msra.mxu0 %v704_v39  ;;  %418 = vmatpush1.msra.mxu1 %v263_v40  ;;  %v729_v5 = vld [vmem:[%s1070_s2 + $0x148] sm:$0xff]  ;;  %v728_v6 = vld [vmem:[%s1070_s2 + $0x140] sm:$0xff]  ;;  %v727_v7 = vld [vmem:[%s1070_s2 + $0x138] sm:$0xff]  ;;  %v595_v38 = vstv %s590_s14 }
  0x21   : > { %336 = vmatprep.subr.mxu0 %v703_v41  ;;  %419 = vmatprep.subr.mxu1 %v262_v42  ;;  %v726_v8 = vld [vmem:[%s1070_s2 + $0x130] sm:$0xff]  ;;  %v725_v10 = vld [vmem:[%s1070_s2 + $0x128] sm:$0xff]  ;;  %v724_v11 = vld [vmem:[%s1070_s2 + $0x120] sm:$0xff] }
  0x22   : > { %337 = vmatpush1.msra.mxu0 %v702_v43  ;;  %420 = vmatpush1.msra.mxu1 %v261_v44 }
  0x23   : > { %370 = vmatprep.mubr.f32.mxu0 %v794_v9  ;;  %453 = vmatprep.mubr.f32.mxu1 %v794_v9 }
  0x24   : > { %507 = vmatprep.subr.mxu0 %v741_v45  ;;  %754 = vmatprep.subr.mxu1 %v741_v45 }
  0x85   : > { %v209_v46 = vpop.permute.xlu0 %208  ;;  %v237_v47 = vpop.permute.xlu1 %236 }
  0x86   : > { %215 = vst.msk [vmem:[#allocation2 + $0x1] sm:$0xff] %vm214_vm2, %v209_v46 }
  0x89   : > { %v223_v48 = vpop.permute.xlu0 %222  ;;  %v251_v49 = vpop.permute.xlu1 %250 }
  0x8a   : > { %229 = vst.msk [vmem:[#allocation2 + $0x1] sm:$0xff] %vm228_vm3, %v223_v48 }
  0x8b   : > { %243 = vst.msk [vmem:[#allocation2 + $0x1] sm:$0xff] %vm242_vm4, %v237_v47 }
  0x8c   : > { %257 = vst.msk [vmem:[#allocation2 + $0x1] sm:$0xff] %vm256_vm5, %v251_v49 }
  0x8d   : > { %v211_v50 = vpop.permute.xlu0 %210  ;;  %v225_v51 = vpop.permute.xlu1 %224 }
  0x8e   : > { %216 = vst.msk [vmem:[#allocation2 + $0x9] sm:$0xff] %vm214_vm2, %v211_v50 }
  0x8f   : > { %230 = vst.msk [vmem:[#allocation2 + $0x9] sm:$0xff] %vm228_vm3, %v225_v51 }
  0x91   : > { %v239_v52 = vpop.permute.xlu0 %238  ;;  %v253_v53 = vpop.permute.xlu1 %252 }
  0x92   : > { %244 = vst.msk [vmem:[#allocation2 + $0x9] sm:$0xff] %vm242_vm4, %v239_v52 }
  0x93   : > { %258 = vst.msk [vmem:[#allocation2 + $0x9] sm:$0xff] %vm256_vm5, %v253_v53  ;;  %v279_v55 = vld [vmem:[#allocation2 + $0x1] sm:$0xff] }
  0x94   : > { %v259_v56 = vld [vmem:[#allocation2] sm:$0xff]  ;;  %720 = vmatmul.mubr.msk.f32.vlgmr.msra.gmra.mxu0 %vm199_vm0, %v279_v55 }
  0x95   : > { %722 = vmatmul.mubr.msk.f32.vlgmr.msra.gmra.mxu1 %vm199_vm0, %v259_v56  ;;  %508 = vmatpush1.msra.mxu0 %v740_v54 }
  0x96   : > { %763 = vmatpush1.msra.mxu1 %v740_v54  ;;  %509 = vmatprep.subr.mxu0 %v739_v57 }
  0x97   : > { %755 = vmatprep.subr.mxu1 %v739_v57  ;;  %510 = vmatpush1.msra.mxu0 %v738_v58 }
  0x98   : > { %764 = vmatpush1.msra.mxu1 %v738_v58  ;;  %511 = vmatprep.subr.mxu0 %v737_v59 }
  0x99   : > { %756 = vmatprep.subr.mxu1 %v737_v59  ;;  %512 = vmatpush1.msra.mxu0 %v736_v60 }
  0x9a   : > { %765 = vmatpush1.msra.mxu1 %v736_v60  ;;  %513 = vmatprep.subr.mxu0 %v735_v61  ;;  %v280_v63 = vld [vmem:[#allocation2 + $0x9] sm:$0xff] }
  0x9b   : > { %757 = vmatprep.subr.mxu1 %v735_v61  ;;  %v260_v0 = vld [vmem:[#allocation2 + $0x8] sm:$0xff]  ;;  %376 = vmatprep.mubr.f32.mxu0 %v794_v9 }
  0x9c   : > { %459 = vmatprep.mubr.f32.mxu1 %v794_v9  ;;  %514 = vmatpush1.msra.mxu0 %v734_v62  ;;  %v466_v12 = vld [vmem:[#allocation2 + $0x2] sm:$0xff]  ;;  %v467_v13 = vld [vmem:[#allocation2 + $0xa] sm:$0xff] }
  0x9d   : > { %766 = vmatpush1.msra.mxu1 %v734_v62  ;;  %721 = vmatmul.mubr.msk.f32.gmra.mxu0 %vm199_vm0, %v280_v63 }
  0x9e   : > { %723 = vmatmul.mubr.msk.f32.gmra.mxu1 %vm199_vm0, %v260_v0  ;;  %515 = vmatprep.subr.mxu0 %v733_v1 }
  0x9f   : > { %758 = vmatprep.subr.mxu1 %v733_v1  ;;  %516 = vmatpush1.msra.mxu0 %v732_v2 }
  0xa0   : > { %767 = vmatpush1.msra.mxu1 %v732_v2  ;;  %517 = vmatprep.subr.mxu0 %v731_v3 }
  0xa1   : > { %759 = vmatprep.subr.mxu1 %v731_v3  ;;  %518 = vmatpush1.msra.mxu0 %v730_v4 }
  0xa2   : > { %768 = vmatpush1.msra.mxu1 %v730_v4  ;;  %519 = vmatprep.subr.mxu0 %v729_v5 }
  0xa3   : > { %760 = vmatprep.subr.mxu1 %v729_v5  ;;  %520 = vmatpush1.msra.mxu0 %v728_v6 }
  0xa4   : > { %769 = vmatpush1.msra.mxu1 %v728_v6  ;;  %521 = vmatprep.subr.mxu0 %v727_v7 }
  0xa5   : > { %761 = vmatprep.subr.mxu1 %v727_v7  ;;  %522 = vmatpush1.msra.mxu0 %v726_v8 }
  0xa6   : > { %770 = vmatpush1.msra.mxu1 %v726_v8  ;;  %523 = vmatprep.subr.mxu0 %v725_v10 }
  0xa7   : > { %762 = vmatprep.subr.mxu1 %v725_v10  ;;  %524 = vmatpush1.msra.mxu0 %v724_v11 }
  0xa8   : > { %771 = vmatpush1.msra.mxu1 %v724_v11  ;;  %557 = vmatprep.mubr.f32.mxu0 %v794_v9 }
  0xa9   : > { %563 = vmatprep.mubr.f32.mxu1 %v794_v9  ;;  %742 = vmatmul.mubr.msk.f32.vlgmr.msra.gmra.mxu0 %vm199_vm0, %v466_v12  ;;  %v574_v9 = vld [vmem:[%s1071_s3] sm:$0x3] }
  0xaa   : > { %743 = vmatmul.mubr.msk.f32.vlgmr.msra.gmra.mxu1 %vm199_vm0, %v467_v13  ;;  %v579_v28 = vrot.slane %v574_v9, %v578_v22  ;;  %v583_v31 = vrot.slane %v574_v9, %v582_v23 }
 0x154   : > { %v372_v15 = vpop.f32.mrf.mxu0 }
 0x155   : > { %v455_v16 = vpop.f32.mrf.mxu1 }
 0x156   : > { %v374_v18 = vpop.f32.mrf.mxu0  ;;  %v456_v26 = vadd.f32 %v455_v16, %v372_v15 }
 0x157   : > { %v457_v19 = vpop.f32.mrf.mxu1 }
 0x158   : > { %v458_v32 = vadd.f32 %v457_v19, %v374_v18 }
 0x15d   : > { %v378_v20 = vpop.f32.mrf.mxu0 }
 0x15e   : > { %v461_v21 = vpop.f32.mrf.mxu1 }
 0x15f   : > { %v380_v24 = vpop.f32.mrf.mxu0  ;;  %v462_v27 = vadd.f32 %v461_v21, %v378_v20 }
 0x160   : > { %v463_v25 = vpop.f32.mrf.mxu1 }
 0x161   : > { %v464_v33 = vadd.f32 %v463_v25, %v380_v24 }
 0x169   : > { %v559_v29 = vpop.f32.mrf.mxu0 }
 0x16a   : > { %v565_v30 = vpop.f32.mrf.mxu1  ;;  %v570_v34 = vadd.f32 %v559_v29, %v456_v26 }
 0x16b   : > { %v572_v35 = vadd.f32 %v565_v30, %v462_v27  ;;  %v561_v36 = vpop.f32.mrf.mxu0 }
 0x16c   : > { %v567_v37 = vpop.f32.mrf.mxu1  ;;  %v586_v39 = vadd.f32 %v579_v28, %v570_v34  ;;  %v571_v41 = vadd.f32 %v561_v36, %v458_v32 }
 0x16d   : > { %v588_v40 = vadd.f32 %v579_v28, %v572_v35  ;;  %v573_v42 = vadd.f32 %v567_v37, %v464_v33 }
 0x16e   : > { %v587_v43 = vadd.f32 %v583_v31, %v571_v41  ;;  %vm591_vm7 = vcmp.ge.f32.partialorder %v586_v39, 0.0  ;;  %v596_v45 = vmul.f32 %v595_v38, %v586_v39 }
 0x16f   : > { %v589_v44 = vadd.f32 %v583_v31, %v573_v42  ;;  %vm593_vm8 = vcmp.ge.f32.partialorder %v588_v40, 0.0  ;;  %v598_v46 = vmul.f32 %v595_v38, %v588_v40 }
 0x170   : > { %v600_v47 = vsel %vm591_vm7, %v586_v39, %v596_v45  ;;  %vm592_vm9 = vcmp.ge.f32.partialorder %v587_v43, 0.0  ;;  %v597_v48 = vmul.f32 %v595_v38, %v587_v43 }
 0x171   : > { %vm594_vm10 = vcmp.ge.f32.partialorder %v589_v44, 0.0  ;;  %609 = vrot.lane.b32.xlu0 %v600_v47, %s799_s18  ;;  %605 = vst.msk [vmem:[%s1047_s22] sm:$0xff] %vm604_vm6, %v600_v47  ;;  %v602_v49 = vsel %vm593_vm8, %v588_v40, %v598_v46  ;;  %v599_v50 = vmul.f32 %v595_v38, %v589_v44 }
 0x172   : > { %611 = vrot.lane.b32.xlu1 %v602_v49, %s799_s18  ;;  %606 = vst.msk [vmem:[%s1047_s22 + $0x8] sm:$0xff] %vm604_vm6, %v602_v49  ;;  %v601_v51 = vsel %vm592_vm9, %v587_v43, %v597_v48 }
 0x173   : > { %746 = vst.msk [vmem:[%s1047_s22 + $0x20] sm:$0xff] %vm604_vm6, %v601_v51  ;;  %v603_v52 = vsel %vm594_vm10, %v589_v44, %v599_v50 }
 0x174   : > { %747 = vst.msk [vmem:[%s1047_s22 + $0x28] sm:$0xff] %vm604_vm6, %v603_v52 }
 0x175   : > { %623 = vrot.lane.b32.xlu0 %v601_v51, %s799_s18 }
 0x176   : > { %625 = vrot.lane.b32.xlu1 %v603_v52, %s799_s18 }
 0x1e3   : > { %v610_v53 = vpop.permute.xlu0 %609 }
 0x1e4   : > { %744 = vst.msk [vmem:[%s1047_s22 + $0x10] sm:$0xff] %vm604_vm6, %v610_v53  ;;  %v612_v54 = vpop.permute.xlu1 %611 }
 0x1e5   : > { %745 = vst.msk [vmem:[%s1047_s22 + $0x18] sm:$0xff] %vm604_vm6, %v612_v54 }
 0x1e7   : > { %v624_v55 = vpop.permute.xlu0 %623 }
 0x1e8   : > { %748 = vst.msk [vmem:[%s1047_s22 + $0x30] sm:$0xff] %vm604_vm6, %v624_v55  ;;  %v626_v56 = vpop.permute.xlu1 %625 }
 0x1e9   : > { %749 = vst.msk [vmem:[%s1047_s22 + $0x38] sm:$0xff] %vm604_vm6, %v626_v56 }
 0x1ea PF: > { %s15_s17 = sadd.s32 1, %s792_s17  }
 0x1eb   : > { %p12_p4 = scmp.ge.s32.totalorder %s15_s17, 4  }
 0x1ed   :  { %14 = sbr.rel (!%p12_p4) target bundleno = 2 (0x2), region = 74 }

</bundles_post_ra>
